<compile_context>
chip_gen: v5e
topology: v5e:2x2
jax: 0.10.0
libtpu: 0.0.40
codegen_flags: <defaults>
</compile_context>

<pallas_src>
import functools

import jax
import jax.numpy as jnp
from jax.experimental import pallas as pl
from jax.experimental.pallas import tpu as pltpu

EPS = 1e-5


def prenorm_linear_kernel(x_ref, gamma_ref, beta_ref, w_ref, b_ref, o_ref, *,
                          d_actual):
    # x_ref:     (tm, Dp)      rows to process (feature dim padded to 128)
    # gamma_ref: (1, Dp)       LayerNorm weight (f32, zero-padded)
    # beta_ref:  (1, Dp)       LayerNorm bias   (f32, zero-padded)
    # w_ref:     (Dp, Doutp)   Linear weight, (in, out), bf16, zero-padded
    # b_ref:     (1, Doutp)    Linear bias (f32, zero-padded)
    # o_ref:     (tm, Doutp)
    x = x_ref[...].astype(jnp.float32)
    dp = x.shape[-1]

    # LayerNorm over the *real* last dim (biased variance, like nn.LayerNorm).
    if dp == d_actual:
        mean = jnp.mean(x, axis=-1, keepdims=True)
        xc = x - mean
        var = jnp.mean(xc * xc, axis=-1, keepdims=True)
    else:
        # Padded lanes are zero in x, so the plain sum is already correct for
        # the mean; mask them out of the centered values so the variance (and
        # everything downstream) ignores them.
        lane = jax.lax.broadcasted_iota(jnp.int32, (1, dp), 1)
        mask = lane < d_actual
        inv_d = 1.0 / d_actual
        mean = jnp.sum(x, axis=-1, keepdims=True) * inv_d
        xc = jnp.where(mask, x - mean, 0.0)
        var = jnp.sum(xc * xc, axis=-1, keepdims=True) * inv_d

    inv = jax.lax.rsqrt(var + EPS)
    xn = xc * inv
    xn = xn * gamma_ref[...].astype(jnp.float32) + beta_ref[...].astype(jnp.float32)

    # fn: Linear(dim, dim) -> y = norm(x) @ W_t + b
    # bf16 MXU operands, f32 accumulation.
    y = jnp.dot(xn.astype(w_ref.dtype), w_ref[...],
                preferred_element_type=jnp.float32)
    y = y + b_ref[...].astype(jnp.float32)
    o_ref[...] = y.astype(o_ref.dtype)


def _round_up(x, m):
    return (x + m - 1) // m * m


@functools.partial(jax.jit, static_argnames=("tm",))
def prenorm_linear(x, gamma, beta, w_t, b, *, tm=256):
    """x: (B, N, D); gamma/beta: (D,); w_t: (D, Dout) (in, out); b: (Dout,)."""
    B, N, D = x.shape
    Dout = w_t.shape[1]
    M = B * N

    # Lane-dense padding (multiples of 128) for feature / output dims.
    Dp = _round_up(D, 128)
    Doutp = _round_up(Dout, 128)

    # Row tile: large by default, but never bigger than the 8-aligned row count
    # (avoids padding a tiny input up to a huge tile).
    tm_eff = min(tm, _round_up(M, 8))
    Mp = _round_up(M, tm_eff)

    x2 = jnp.pad(x.reshape(M, D), ((0, Mp - M), (0, Dp - D)))
    gamma2 = jnp.pad(gamma.reshape(1, D).astype(jnp.float32),
                     ((0, 0), (0, Dp - D)))
    beta2 = jnp.pad(beta.reshape(1, D).astype(jnp.float32),
                    ((0, 0), (0, Dp - D)))
    # bf16 matmul operands (cast once here, not per grid step in the kernel).
    w_p = jnp.pad(w_t, ((0, Dp - D), (0, Doutp - Dout))).astype(jnp.bfloat16)
    b_p = jnp.pad(b.reshape(1, Dout).astype(jnp.float32),
                  ((0, 0), (0, Doutp - Dout)))

    grid = (Mp // tm_eff,)
    kernel = functools.partial(prenorm_linear_kernel, d_actual=D)

    cost = pl.CostEstimate(
        flops=2 * Mp * Dp * Doutp,
        transcendentals=Mp,  # one rsqrt per row
        bytes_accessed=(Mp * Dp * x2.dtype.itemsize
                        + Dp * Doutp * w_p.dtype.itemsize
                        + Mp * Doutp * x.dtype.itemsize),
    )

    out = pl.pallas_call(
        kernel,
        out_shape=jax.ShapeDtypeStruct((Mp, Doutp), x.dtype),
        grid_spec=pltpu.PrefetchScalarGridSpec(
            num_scalar_prefetch=0,
            grid=grid,
            in_specs=[
                pl.BlockSpec((tm_eff, Dp), lambda i: (i, 0)),    # x rows
                pl.BlockSpec((1, Dp), lambda i: (0, 0)),         # gamma
                pl.BlockSpec((1, Dp), lambda i: (0, 0)),         # beta
                pl.BlockSpec((Dp, Doutp), lambda i: (0, 0)),     # weight (in, out)
                pl.BlockSpec((1, Doutp), lambda i: (0, 0)),      # bias
            ],
            out_specs=pl.BlockSpec((tm_eff, Doutp), lambda i: (i, 0)),
        ),
        compiler_params=pltpu.CompilerParams(
            dimension_semantics=("parallel",),
            vmem_limit_bytes=32 * 1024 * 1024,
        ),
        cost_estimate=cost,
    )(x2, gamma2, beta2, w_p, b_p)
    return out[:M, :Dout].reshape(B, N, Dout)


def _reference(x, gamma, beta, w_t, b):
    # Pure-f32 reference (matches nn.LayerNorm + nn.Linear semantics).
    xf = x.astype(jnp.float32)
    mean = jnp.mean(xf, axis=-1, keepdims=True)
    var = jnp.mean((xf - mean) ** 2, axis=-1, keepdims=True)
    xn = (xf - mean) * jax.lax.rsqrt(var + EPS)
    xn = xn * gamma + beta
    return (xn @ w_t + b).astype(x.dtype)


if __name__ == "__main__":
    key = jax.random.PRNGKey(0)
    B, N, D = 2, 8, 32  # batch, tokens, dim

    k_x, k_w, k_b, k_g, k_be = jax.random.split(key, 5)
    x = jax.random.normal(k_x, (B, N, D), dtype=jnp.float32)

    # LayerNorm params (PyTorch default init: weight=1, bias=0; perturbed
    # deterministically so the test is non-trivial).
    gamma = jnp.ones((D,), jnp.float32) + 0.1 * jax.random.normal(k_g, (D,))
    beta = 0.1 * jax.random.normal(k_be, (D,))

    # fn = Linear(D, D): PyTorch weight is (out, in) -> pass transposed (in, out)
    w = jax.random.normal(k_w, (D, D), dtype=jnp.float32) * (1.0 / jnp.sqrt(D))
    b = 0.05 * jax.random.normal(k_b, (D,), dtype=jnp.float32)
    w_t = w.T

    out = prenorm_linear(x, gamma, beta, w_t, b)
    jax.block_until_ready(out)

    ref = _reference(x, gamma, beta, w_t, b)
    assert out.shape == (B, N, D)
    # Tolerance accounts for the bf16 MXU operands (f32 accumulation).
    assert jnp.allclose(out, ref, atol=3e-2, rtol=3e-2), "mismatch vs reference"

    print("KERNEL_OK")
</pallas_src>

<mosaic_0001>
module attributes {stable_mosaic.version = 11 : i64} {
  func.func @prenorm_linear_kernel(%arg0: i32, %arg1: memref<16x128xf32, #tpu.memory_space<vmem>>, %arg2: memref<1x128xf32, #tpu.memory_space<vmem>>, %arg3: memref<1x128xf32, #tpu.memory_space<vmem>>, %arg4: memref<128x128xbf16, #tpu.memory_space<vmem>>, %arg5: memref<1x128xf32, #tpu.memory_space<vmem>>, %arg6: memref<16x128xf32, #tpu.memory_space<vmem>>) attributes {dimension_semantics = [#tpu.dimension_semantics<parallel>], iteration_bounds = array<i64: 1>, scalar_prefetch = 0 : i64, scratch_operands = 0 : i64, tpu.core_type = #tpu.core_type<tc>, window_params = [{transform_indices = @transform_0, window_bounds = array<i64: 16, 128>}, {pipeline_mode = #tpu.pipeline_mode<synchronous>, transform_indices = @transform_1, window_bounds = array<i64: 1, 128>}, {pipeline_mode = #tpu.pipeline_mode<synchronous>, transform_indices = @transform_2, window_bounds = array<i64: 1, 128>}, {pipeline_mode = #tpu.pipeline_mode<synchronous>, transform_indices = @transform_3, window_bounds = array<i64: 128, 128>}, {pipeline_mode = #tpu.pipeline_mode<synchronous>, transform_indices = @transform_4, window_bounds = array<i64: 1, 128>}, {transform_indices = @transform_5, window_bounds = array<i64: 16, 128>}]} {
    %c0 = arith.constant 0 : index
    %c0_0 = arith.constant 0 : index
    %0 = vector.load %arg1[%c0, %c0_0] : memref<16x128xf32, #tpu.memory_space<vmem>>, vector<16x128xf32>
    %1 = tpu.iota {dimensions = array<i32: 1>} : vector<1x128xi32>
    %c32_i32 = arith.constant 32 : i32
    %2 = vector.broadcast %c32_i32 : i32 to vector<1x128xi32>
    %3 = arith.cmpi slt, %1, %2 : vector<1x128xi32>
    %cst = arith.constant dense<0.000000e+00> : vector<16xf32>
    %4 = vector.multi_reduction <add>, %0, %cst [1] : vector<16x128xf32> to vector<16xf32>
    %5 = vector.shape_cast %4 : vector<16xf32> to vector<16x1xf32>
    %cst_1 = arith.constant 3.125000e-02 : f32
    %6 = vector.broadcast %cst_1 : f32 to vector<16x1xf32>
    %7 = arith.mulf %5, %6 : vector<16x1xf32>
    %8 = vector.broadcast %7 : vector<16x1xf32> to vector<16x128xf32>
    %9 = arith.subf %0, %8 : vector<16x128xf32>
    %cst_2 = arith.constant 0.000000e+00 : f32
    %10 = vector.shape_cast %3 : vector<1x128xi1> to vector<1x128xi1>
    %11 = vector.broadcast %10 : vector<1x128xi1> to vector<16x128xi1>
    %12 = vector.broadcast %cst_2 : f32 to vector<16x128xf32>
    %13 = arith.select %11, %9, %12 : vector<16x128xi1>, vector<16x128xf32>
    %14 = arith.mulf %13, %13 : vector<16x128xf32>
    %cst_3 = arith.constant dense<0.000000e+00> : vector<16xf32>
    %15 = vector.multi_reduction <add>, %14, %cst_3 [1] : vector<16x128xf32> to vector<16xf32>
    %16 = vector.shape_cast %15 : vector<16xf32> to vector<16x1xf32>
    %cst_4 = arith.constant 3.125000e-02 : f32
    %17 = vector.broadcast %cst_4 : f32 to vector<16x1xf32>
    %18 = arith.mulf %16, %17 : vector<16x1xf32>
    %cst_5 = arith.constant 9.99999974E-6 : f32
    %19 = vector.broadcast %cst_5 : f32 to vector<16x1xf32>
    %20 = arith.addf %18, %19 : vector<16x1xf32>
    %21 = math.rsqrt %20 : vector<16x1xf32>
    %22 = vector.broadcast %21 : vector<16x1xf32> to vector<16x128xf32>
    %23 = arith.mulf %13, %22 : vector<16x128xf32>
    %c0_6 = arith.constant 0 : index
    %c0_7 = arith.constant 0 : index
    %24 = vector.load %arg2[%c0_6, %c0_7] : memref<1x128xf32, #tpu.memory_space<vmem>>, vector<1x128xf32>
    %25 = vector.broadcast %24 : vector<1x128xf32> to vector<16x128xf32>
    %26 = arith.mulf %23, %25 : vector<16x128xf32>
    %c0_8 = arith.constant 0 : index
    %c0_9 = arith.constant 0 : index
    %27 = vector.load %arg3[%c0_8, %c0_9] : memref<1x128xf32, #tpu.memory_space<vmem>>, vector<1x128xf32>
    %28 = vector.broadcast %27 : vector<1x128xf32> to vector<16x128xf32>
    %29 = arith.addf %26, %28 : vector<16x128xf32>
    %30 = arith.truncf %29 : vector<16x128xf32> to vector<16x128xbf16>
    %c0_10 = arith.constant 0 : index
    %c0_11 = arith.constant 0 : index
    %31 = vector.load %arg4[%c0_10, %c0_11] : memref<128x128xbf16, #tpu.memory_space<vmem>>, vector<128x128xbf16>
    %cst_12 = arith.constant dense<0.000000e+00> : vector<16x128xf32>
    %32 = tpu.matmul %30, %31, %cst_12 {dimension_numbers = #tpu.dot_dimension_numbers<[1], [0], [0], [1], [0, 0, 1, 1], [], []>} : vector<16x128xbf16>, vector<128x128xbf16>, vector<16x128xf32> -> vector<16x128xf32>
    %c0_13 = arith.constant 0 : index
    %c0_14 = arith.constant 0 : index
    %33 = vector.load %arg5[%c0_13, %c0_14] : memref<1x128xf32, #tpu.memory_space<vmem>>, vector<1x128xf32>
    %34 = vector.broadcast %33 : vector<1x128xf32> to vector<16x128xf32>
    %35 = arith.addf %32, %34 : vector<16x128xf32>
    %c0_15 = arith.constant 0 : index
    %c0_16 = arith.constant 0 : index
    %36 = vector.load %arg6[%c0_15, %c0_16] : memref<16x128xf32, #tpu.memory_space<vmem>>, vector<16x128xf32>
    tpu.vector_store %arg6[%c0_15, %c0_16], %35 {strides = array<i32>} : memref<16x128xf32, #tpu.memory_space<vmem>>, vector<16x128xf32>,
    return
  }
  func.func @transform_0(%arg0: i32) -> (i32, i32) {
    %c0_i32 = arith.constant 0 : i32
    %c0_i32_0 = arith.constant 0 : i32
    return %arg0, %c0_i32 : i32, i32
  }
  func.func @transform_1(%arg0: i32) -> (i32, i32) {
    %c0_i32 = arith.constant 0 : i32
    %c0_i32_0 = arith.constant 0 : i32
    %c0_i32_1 = arith.constant 0 : i32
    return %c0_i32, %c0_i32_0 : i32, i32
  }
  func.func @transform_2(%arg0: i32) -> (i32, i32) {
    %c0_i32 = arith.constant 0 : i32
    %c0_i32_0 = arith.constant 0 : i32
    %c0_i32_1 = arith.constant 0 : i32
    return %c0_i32, %c0_i32_0 : i32, i32
  }
  func.func @transform_3(%arg0: i32) -> (i32, i32) {
    %c0_i32 = arith.constant 0 : i32
    %c0_i32_0 = arith.constant 0 : i32
    %c0_i32_1 = arith.constant 0 : i32
    return %c0_i32, %c0_i32_0 : i32, i32
  }
  func.func @transform_4(%arg0: i32) -> (i32, i32) {
    %c0_i32 = arith.constant 0 : i32
    %c0_i32_0 = arith.constant 0 : i32
    %c0_i32_1 = arith.constant 0 : i32
    return %c0_i32, %c0_i32_0 : i32, i32
  }
  func.func @transform_5(%arg0: i32) -> (i32, i32) {
    %c0_i32 = arith.constant 0 : i32
    %c0_i32_0 = arith.constant 0 : i32
    return %arg0, %c0_i32 : i32, i32
  }
}

</mosaic_0001>

<bundles_post_ra>
// kernel: prenorm_linear.1
= control target key start
LH: loop header
LB: loop body
LE: loop exit
PB: predicated region body
PF: predicated region fallthrough
CT: control target
= control target key end

     0   :  { %v22_v2 = vlaneseq  ;;  %s292_s0 = inlined_call_operand.vmem [shape: f32[16,128], index: 0, kind: input, shape index: {}]   ;;  %s293_s1 = inlined_call_operand.vmem [shape: f32[1,128], index: 1, kind: input, shape index: {}]   ;;  %s294_s2 = inlined_call_operand.vmem [shape: f32[1,128], index: 2, kind: input, shape index: {}]   ;;  %s295_s4 = inlined_call_operand.vmem [shape: f32[1,128], index: 4, kind: input, shape index: {}]   ;;  %s296_s3 = inlined_call_operand.vmem [shape: bf16[128,128], index: 3, kind: input, shape index: {}]   ;;  %s297_s5 = inlined_call_operand.vmem [shape: f32[16,128], index: 5, kind: output, shape index: {}]  }
   0x1   :  { %v20_v0 = vld [vmem:[%s292_s0] sm:$0xff]  ;;  %v21_v1 = vld [vmem:[%s292_s0 + $0x8] sm:$0xff]  ;;  %v209_v14 = vld [vmem:[%s296_s3 + $0x38] sm:$0xff] }
   0x2   :  { %25 = vadd.xlane.f32.xlu0 %v20_v0  ;;  %v23_v3 = vand.u32 127, %v22_v2  ;;  %150 = vmatpush.bf16.msra.mxu0 %v209_v14  ;;  %v208_v15 = vld [vmem:[%s296_s3 + $0x30] sm:$0xff]  ;;  %v207_v16 = vld [vmem:[%s296_s3 + $0x28] sm:$0xff]  ;;  %v206_v17 = vld [vmem:[%s296_s3 + $0x20] sm:$0xff] }
   0x3   :  { %v205_v18 = vld [vmem:[%s296_s3 + $0x18] sm:$0xff]  ;;  %v204_v19 = vld [vmem:[%s296_s3 + $0x10] sm:$0xff]  ;;  %v203_v20 = vld [vmem:[%s296_s3 + $0x8] sm:$0xff] }
   0x4   :  { %vm24_vm0 = vcmp.lt.s32.totalorder %v23_v3, 32  ;;  %v202_v22 = vld [vmem:[%s296_s3] sm:$0xff] }
   0x5   :  { %v210_v41 = vld [vmem:[%s293_s1] ss:$0 sm:$0xff] }
   0x6   :  { %151 = vmatpush.bf16.msra.mxu0 %v208_v15  ;;  %v211_v46 = vld [vmem:[%s294_s2] ss:$0 sm:$0xff] }
   0x7   :  { %v212_v51 = vld [vmem:[%s295_s4] ss:$0 sm:$0xff] }
   0xa   :  { %27 = vadd.xlane.f32.xlu0 %v21_v1  ;;  %152 = vmatpush.bf16.msra.mxu0 %v207_v16 }
   0xe   :  { %153 = vmatpush.bf16.msra.mxu0 %v206_v17 }
  0x12   :  { %154 = vmatpush.bf16.msra.mxu0 %v205_v18 }
  0x16   :  { %155 = vmatpush.bf16.msra.mxu0 %v204_v19 }
  0x1a   :  { %156 = vmatpush.bf16.msra.mxu0 %v203_v20 }
  0x1e   :  { %157 = vmatpush.bf16.msra.mxu0 %v202_v22 }
  0x75   :  { %v26_v4 = vpop.xlane.xlu0 %25 }
  0x76   :  { %v29_v5 = vmul.f32 0.03125, %v26_v4 }
  0x78   :  { %v31_v6 = vsub.f32 %v20_v0, %v29_v5 }
  0x7a   :  { %v35_v7 = vsel %vm24_vm0, %v31_v6, 0.0 }
  0x7b   :  { %v37_v8 = vmul.f32 %v35_v7, %v35_v7 }
  0x7d   :  { %39 = vadd.xlane.f32.xlu1 %v37_v8  ;;  %v28_v9 = vpop.xlane.xlu0 %27 }
  0x7e   :  { %v30_v10 = vmul.f32 0.03125, %v28_v9 }
  0x80   :  { %v32_v11 = vsub.f32 %v21_v1, %v30_v10 }
  0x82   :  { %v36_v12 = vsel %vm24_vm0, %v32_v11, 0.0 }
  0x83   :  { %v38_v13 = vmul.f32 %v36_v12, %v36_v12 }
  0x85   :  { %41 = vadd.xlane.f32.xlu1 %v38_v13 }
  0xf0   :  { %v40_v21 = vpop.xlane.xlu1 %39 }
  0xf1   :  { %v43_v23 = vmul.f32 0.03125, %v40_v21 }
  0xf3   :  { %v45_v24 = vadd.f32 1e-05, %v43_v23 }
  0xf5   :  { %213 = vrsqrt.f32 %v45_v24  ;;  %vm53_vm2 = vweird.f32 %v45_v24 }
  0xf8   :  { %v42_v25 = vpop.xlane.xlu1 %41 }
  0xf9   :  { %v44_v26 = vmul.f32 0.03125, %v42_v25 }
  0xfb   :  { %v214_v27 = vpop.eup %213  ;;  %v46_v28 = vadd.f32 1e-05, %v44_v26 }
  0xfc   :  { %v48_v29 = vmul.f32 %v214_v27, %v45_v24  ;;  %vm54_vm1 = vweird.f32 %v214_v27 }
  0xfd   :  { %215 = vrsqrt.f32 %v46_v28  ;;  %vm55_vm3 = vmor %vm53_vm2, %vm54_vm1  ;;  %vm63_vm5 = vweird.f32 %v46_v28 }
  0xfe   :  { %v49_v30 = vmul.f32 %v214_v27, %v48_v29 }
 0x100   :  { %v50_v31 = vmul.f32 0.5, %v49_v30 }
 0x102   :  { %v51_v32 = vsub.f32 1.5, %v50_v31 }
 0x103   :  { %v216_v33 = vpop.eup %215 }
 0x104   :  { %v52_v34 = vmul.f32 %v214_v27, %v51_v32  ;;  %v58_v35 = vmul.f32 %v216_v33, %v46_v28  ;;  %vm64_vm4 = vweird.f32 %v216_v33 }
 0x105   :  { %vm65_vm6 = vmor %vm63_vm5, %vm64_vm4 }
 0x106   :  { %v59_v36 = vmul.f32 %v216_v33, %v58_v35  ;;  %v56_v38 = vsel %vm55_vm3, %v214_v27, %v52_v34 }
 0x107   :  { %v67_v40 = vmul.f32 %v56_v38, %v35_v7 }
 0x108   :  { %v60_v37 = vmul.f32 0.5, %v59_v36 }
 0x109   :  { %v73_v45 = vmul.f32 %v210_v41, %v67_v40 }
 0x10a   :  { %v61_v39 = vsub.f32 1.5, %v60_v37 }
 0x10b   :  { %v79_v48 = vadd.f32 %v211_v46, %v73_v45 }
 0x10c   :  { %v62_v42 = vmul.f32 %v216_v33, %v61_v39 }
 0x10e   :  { %v66_v43 = vsel %vm65_vm6, %v216_v33, %v62_v42 }
 0x10f   :  { %v68_v44 = vmul.f32 %v66_v43, %v36_v12 }
 0x111   :  { %v74_v47 = vmul.f32 %v210_v41, %v68_v44 }
 0x113   :  { %v80_v49 = vadd.f32 %v211_v46, %v74_v47 }
 0x115   :  { %v81_v50 = vpack.c.bf16 %v80_v49, %v79_v48 }
 0x117   :  { %158 = vmatmul.bf16.vlgmr.msra.gmra.mxu0 %v81_v50 }
 0x194   :  { %v159_v52 = vpop.f32.mrf.mxu0 }
 0x195   :  { %v160_v53 = vadd.f32 %v212_v51, %v159_v52 }
 0x197   :  { %164 = vst [vmem:[%s297_s5] sm:$0xff] %v160_v53 }
 0x19c   :  { %v161_v54 = vpop.f32.mrf.mxu0 }
 0x19d   :  { %v162_v55 = vadd.f32 %v212_v51, %v161_v54 }
 0x19f   :  { %165 = vst [vmem:[%s297_s5 + $0x8] sm:$0xff] %v162_v55 }

</bundles_post_ra>
